<compile_context>
chip_gen: v7x
topology: tpu7x:2x2x1
jax: 0.10.0
libtpu: 0.0.40
codegen_flags: <defaults>
</compile_context>

<pallas_src>
import jax
import jax.numpy as jnp
from jax.experimental import pallas as pl
from jax.experimental.pallas import tpu as pltpu

BN_EPS = 1e-5
LANE = 128


def _fused_kernel(p_ref, w_ref, gb_ref, o_ref):
    # p_ref : (M, K)    im2col patches (unpadded K; Mosaic tiles internally)
    # w_ref : (K, Cp)   flattened conv weight, Cout zero-padded to lane width
    # gb_ref: (2, Cp)   row 0 = BN gamma (pad=1.0), row 1 = BN beta (pad=0.0)
    # o_ref : (M, Cp)
    acc = jnp.dot(p_ref[...], w_ref[...], preferred_element_type=jnp.float32)

    # Training-mode BatchNorm statistics over the M rows == (N, Do, Ho, Wo),
    # single pass (sum + sum-of-squares).  Fine at this tiny M; a scaled
    # version should switch to a two-pass / accumulator reduction.
    inv_m = 1.0 / acc.shape[0]
    s = jnp.sum(acc, axis=0, keepdims=True)
    ss = jnp.sum(acc * acc, axis=0, keepdims=True)
    mean = s * inv_m
    var = jnp.maximum(ss * inv_m - mean * mean, 0.0)   # biased var, fp-safe

    gamma = gb_ref[0:1, :]
    beta = gb_ref[1:2, :]
    scale = gamma * jax.lax.rsqrt(var + BN_EPS)

    # Fold BN shift + ReLU6 + (s1 + s1) into a single FMA + clamp:
    #   2 * relu6((acc - mean) * scale + beta)
    #     == min(max(acc * scale2 + shift2, 0), 12)
    scale2 = scale + scale
    shift2 = (beta - mean * scale) * 2.0
    o_ref[...] = jnp.minimum(jnp.maximum(acc * scale2 + shift2, 0.0), 12.0)


@jax.jit
def model_forward(x, conv_w, conv_b, bn_gamma, bn_beta):
    # x: (N, Cin, D, H, W) float32 (NCDHW, matching PyTorch).
    # conv_b is accepted for interface parity but unused: a per-channel
    # constant added before training-mode BatchNorm is exactly removed by the
    # mean subtraction, so the output is bit-for-bit unaffected.
    del conv_b
    Cout, Cin, kd, kh, kw = conv_w.shape
    N = x.shape[0]
    K = Cin * kd * kh * kw

    # Single-op im2col: output feature dim is channel-major, row-major over
    # the (kd, kh, kw) offsets -> same ordering as conv_w.reshape(Cout, K).
    patches = jax.lax.conv_general_dilated_patches(
        x, (kd, kh, kw), (1, 1, 1), "VALID",
        dimension_numbers=("NCDHW", "OIDHW", "NDHWC"))
    _, Do, Ho, Wo, _ = patches.shape
    patches = patches.reshape(N * Do * Ho * Wo, K)      # (M, K), unpadded
    M = patches.shape[0]

    # Only the tiny weight / gamma-beta tensors get padded to lane width for a
    # lane-dense output; the activation matrix stays unpadded (full-array
    # blocks are exempt from the (8,128) divisibility rule).
    Cp = pl.cdiv(Cout, LANE) * LANE
    w_pad = jnp.pad(conv_w.reshape(Cout, K).T, ((0, 0), (0, Cp - Cout)))
    gb = jnp.stack(
        [jnp.pad(bn_gamma, (0, Cp - Cout), constant_values=1.0),
         jnp.pad(bn_beta, (0, Cp - Cout))],
        axis=0)                                          # (2, Cp)

    cost = pl.CostEstimate(
        flops=2 * M * K * Cp + 10 * M * Cp,
        transcendentals=Cp,
        bytes_accessed=4 * (M * K + K * Cp + 2 * Cp + M * Cp))

    out = pl.pallas_call(
        _fused_kernel,
        out_shape=jax.ShapeDtypeStruct((M, Cp), jnp.float32),
        in_specs=[
            pl.BlockSpec(memory_space=pltpu.MemorySpace.VMEM),
            pl.BlockSpec(memory_space=pltpu.MemorySpace.VMEM),
            pl.BlockSpec(memory_space=pltpu.MemorySpace.VMEM),
        ],
        out_specs=pl.BlockSpec(memory_space=pltpu.MemorySpace.VMEM),
        cost_estimate=cost,
    )(patches, w_pad, gb)

    # (M, Cp) -> (N, Do, Ho, Wo, Cout) -> (N, Cout, Do, Ho, Wo); these fuse
    # inside the same jit'd executable as the pallas_call.
    out = out[:, :Cout].reshape(N, Do, Ho, Wo, Cout).transpose(0, 4, 1, 2, 3)
    return out


if __name__ == "__main__":
    key = jax.random.PRNGKey(0)
    kx, kw_, kb = jax.random.split(key, 3)

    # Input matches the module's x1 = torch.randn(2, 4, 4, 4, 4)
    x = jax.random.normal(kx, (2, 4, 4, 4, 4), jnp.float32)

    # Deterministic parameter init (Conv3d: Cout=5, Cin=4, k=3; BN defaults).
    fan_in = 4 * 3 * 3 * 3
    bound = 1.0 / (fan_in ** 0.5)
    conv_w = jax.random.uniform(kw_, (5, 4, 3, 3, 3), jnp.float32, -bound, bound)
    conv_b = jax.random.uniform(kb, (5,), jnp.float32, -bound, bound)
    bn_gamma = jnp.ones((5,), jnp.float32)
    bn_beta = jnp.zeros((5,), jnp.float32)

    out = model_forward(x, conv_w, conv_b, bn_gamma, bn_beta)
    jax.block_until_ready(out)
    assert out.shape == (2, 5, 2, 2, 2), out.shape
    print("KERNEL_OK")
</pallas_src>

<mosaic_0001>
module attributes {stable_mosaic.version = 11 : i64} {
  func.func @_fused_kernel(%arg0: memref<16x108xf32, #tpu.memory_space<vmem>>, %arg1: memref<108x128xf32, #tpu.memory_space<vmem>>, %arg2: memref<2x128xf32, #tpu.memory_space<vmem>>, %arg3: memref<16x128xf32, #tpu.memory_space<vmem>>) attributes {dimension_semantics = [], scalar_prefetch = 0 : i64, scratch_operands = 0 : i64, tpu.core_type = #tpu.core_type<tc>} {
    %c0 = arith.constant 0 : index
    %c0_0 = arith.constant 0 : index
    %0 = vector.load %arg0[%c0, %c0_0] : memref<16x108xf32, #tpu.memory_space<vmem>>, vector<16x108xf32>
    %c0_1 = arith.constant 0 : index
    %c0_2 = arith.constant 0 : index
    %1 = vector.load %arg1[%c0_1, %c0_2] : memref<108x128xf32, #tpu.memory_space<vmem>>, vector<108x128xf32>
    %cst = arith.constant dense<0.000000e+00> : vector<16x128xf32>
    %2 = tpu.matmul %0, %1, %cst {dimension_numbers = #tpu.dot_dimension_numbers<[1], [0], [0], [1], [0, 0, 1, 1], [], []>} : vector<16x108xf32>, vector<108x128xf32>, vector<16x128xf32> -> vector<16x128xf32>
    %cst_3 = arith.constant dense<0.000000e+00> : vector<128xf32>
    %3 = vector.multi_reduction <add>, %2, %cst_3 [0] : vector<16x128xf32> to vector<128xf32>
    %4 = vector.shape_cast %3 : vector<128xf32> to vector<1x128xf32>
    %5 = arith.mulf %2, %2 : vector<16x128xf32>
    %cst_4 = arith.constant dense<0.000000e+00> : vector<128xf32>
    %6 = vector.multi_reduction <add>, %5, %cst_4 [0] : vector<16x128xf32> to vector<128xf32>
    %7 = vector.shape_cast %6 : vector<128xf32> to vector<1x128xf32>
    %cst_5 = arith.constant 6.250000e-02 : f32
    %8 = vector.broadcast %cst_5 : f32 to vector<1x128xf32>
    %9 = arith.mulf %4, %8 : vector<1x128xf32>
    %cst_6 = arith.constant 6.250000e-02 : f32
    %10 = vector.broadcast %cst_6 : f32 to vector<1x128xf32>
    %11 = arith.mulf %7, %10 : vector<1x128xf32>
    %12 = arith.mulf %9, %9 : vector<1x128xf32>
    %13 = arith.subf %11, %12 : vector<1x128xf32>
    %cst_7 = arith.constant 0.000000e+00 : f32
    %14 = vector.broadcast %cst_7 : f32 to vector<1x128xf32>
    %15 = arith.maximumf %13, %14 : vector<1x128xf32>
    %c0_8 = arith.constant 0 : index
    %c0_9 = arith.constant 0 : index
    %16 = vector.load %arg2[%c0_8, %c0_9] : memref<2x128xf32, #tpu.memory_space<vmem>>, vector<1x128xf32>
    %c1 = arith.constant 1 : index
    %c0_10 = arith.constant 0 : index
    %17 = vector.load %arg2[%c1, %c0_10] : memref<2x128xf32, #tpu.memory_space<vmem>>, vector<1x128xf32>
    %cst_11 = arith.constant 9.99999974E-6 : f32
    %18 = vector.broadcast %cst_11 : f32 to vector<1x128xf32>
    %19 = arith.addf %15, %18 : vector<1x128xf32>
    %20 = math.rsqrt %19 : vector<1x128xf32>
    %21 = arith.mulf %16, %20 : vector<1x128xf32>
    %22 = arith.addf %21, %21 : vector<1x128xf32>
    %23 = arith.mulf %9, %21 : vector<1x128xf32>
    %24 = arith.subf %17, %23 : vector<1x128xf32>
    %cst_12 = arith.constant 2.000000e+00 : f32
    %25 = vector.broadcast %cst_12 : f32 to vector<1x128xf32>
    %26 = arith.mulf %24, %25 : vector<1x128xf32>
    %27 = vector.broadcast %22 : vector<1x128xf32> to vector<16x128xf32>
    %28 = arith.mulf %2, %27 : vector<16x128xf32>
    %29 = vector.broadcast %26 : vector<1x128xf32> to vector<16x128xf32>
    %30 = arith.addf %28, %29 : vector<16x128xf32>
    %cst_13 = arith.constant 0.000000e+00 : f32
    %31 = vector.broadcast %cst_13 : f32 to vector<16x128xf32>
    %32 = arith.maximumf %30, %31 : vector<16x128xf32>
    %cst_14 = arith.constant 1.200000e+01 : f32
    %33 = vector.broadcast %cst_14 : f32 to vector<16x128xf32>
    %34 = arith.minimumf %32, %33 : vector<16x128xf32>
    %c0_15 = arith.constant 0 : index
    %c0_16 = arith.constant 0 : index
    %35 = vector.load %arg3[%c0_15, %c0_16] : memref<16x128xf32, #tpu.memory_space<vmem>>, vector<16x128xf32>
    tpu.vector_store %arg3[%c0_15, %c0_16], %34 {strides = array<i32>} : memref<16x128xf32, #tpu.memory_space<vmem>>, vector<16x128xf32>,
    return
  }
}

</mosaic_0001>

<bundles_post_ra>
// kernel: model_forward.1
= control target key start
LH: loop header
LB: loop body
LE: loop exit
PB: predicated region body
PF: predicated region fallthrough
CT: control target
= control target key end

     0   :  { %vm31_vm0 = vcmask 883712   ;;  %s383_s0 = inlined_call_operand.vmem [shape: f32[16,108], index: 0, kind: input, shape index: {}]   ;;  %s384_s1 = inlined_call_operand.vmem [shape: f32[108,128], index: 1, kind: input, shape index: {}]   ;;  %s385_s2 = inlined_call_operand.vmem [shape: f32[2,128], index: 2, kind: input, shape index: {}]   ;;  %s386_s3 = inlined_call_operand.hbm [shape: f32[16,128], index: 3, kind: output, shape index: {}]  }
   0x1   :  { %v17_v0 = vld [vmem:[%s384_s1] sm:$0xff]  ;;  %v18_v1 = vld [vmem:[%s384_s1 + $0x8] sm:$0xff]  ;;  %v19_v2 = vld [vmem:[%s384_s1 + $0x10] sm:$0xff] }
   0x2   :  { %v231_v3 = vpack.c.bf16 %v18_v1, %v17_v0  ;;  %v20_v4 = vld [vmem:[%s384_s1 + $0x18] sm:$0xff]  ;;  %v21_v6 = vld [vmem:[%s384_s1 + $0x20] sm:$0xff]  ;;  %v22_v7 = vld [vmem:[%s384_s1 + $0x28] sm:$0xff] }
   0x3   :  { %v235_v5 = vpack.c.bf16 %v20_v4, %v19_v2  ;;  %v239_v8 = vpack.c.bf16 %v22_v7, %v21_v6  ;;  %v15_v9 = vld [vmem:[%s383_s0] sm:$0xff] }
   0x4   :  { %232 = vmatprep.subr.bf16.mxu0 %v231_v3 }
   0x5   :  { %234 = vmatpush3.bf16.msra.mxu0 %v231_v3 }
   0x6   :  { %236 = vmatprep.subr.bf16.mxu0 %v235_v5 }
   0x7   :  { %8 = vsyncpa [#allocation3], 0  ;;  %v23_v10 = vld [vmem:[%s384_s1 + $0x30] sm:$0xff]  ;;  %v24_v11 = vld [vmem:[%s384_s1 + $0x38] sm:$0xff]  ;;  %228 = vmatprep.mubr.msk.f32.mxu0 %vm31_vm0, %v15_v9  ;;  %vm38_vm1 = vcmask 1043456   ;;  %vm291_vm2 = vmmov 1   ;;  %v147_v47 = vlaneseq }
   0x8   :  { %v243_v12 = vpack.c.bf16 %v24_v11, %v23_v10  ;;  %v25_v13 = vld [vmem:[%s384_s1 + $0x40] sm:$0xff]  ;;  %v26_v14 = vld [vmem:[%s384_s1 + $0x48] sm:$0xff]  ;;  %v27_v16 = vld [vmem:[%s384_s1 + $0x50] sm:$0xff]  ;;  %s292_s19 = smov [#allocation2]  }
   0x9   :  { %238 = vmatpush3.bf16.msra.mxu0 %v235_v5  ;;  %v247_v15 = vpack.c.bf16 %v26_v14, %v25_v13  ;;  %v28_v17 = vld [vmem:[%s384_s1 + $0x58] sm:$0xff]  ;;  %v29_v19 = vld [vmem:[%s384_s1 + $0x60] sm:$0xff]  ;;  %v30_v20 = vld [vmem:[%s384_s1 + $0x68] sm:$0xf]  ;;  %v148_v48 = vshrl.u32 %v147_v47, 7  ;;  %s170_s20 = sshll.u32 %s292_s19, 4  ;;  %s171_s20 = int_to_ptr.vmem [resolvable:$true] %s170_s20 }
   0xa   :  { %240 = vmatprep.subr.bf16.mxu0 %v239_v8  ;;  %v251_v18 = vpack.c.bf16 %v28_v17, %v27_v16  ;;  %v255_v21 = vpack.c.bf16 %v30_v20, %v29_v19  ;;  %vm256_vm3 = vmpackc.low %vm38_vm1, %vm291_vm2  ;;  %v16_v22 = vld [vmem:[%s383_s0 + $0x8] sm:$0xff]  ;;  %v138_v49 = vld [vmem:[%s385_s2] sm:$0x1]  ;;  %p272_p1 = scmp.lt.s32.totalorder %s171_s20, %s171_s20 }
   0xb   :  { %v149_v52 = vsub.s32 0, %v148_v48  ;;  %v139_v53 = vld [vmem:[%s385_s2 + $0x1] sm:$0x1]  ;;  %s267_s2 = scalar_lea.vmem %s171_s20, 256 }
   0xc   :  { %p268_p0 = scmp.ne.s32.totalorder %s171_s20, %s267_s2  ;;  %p273_p2 = scmp.lt.s32.totalorder %s267_s2, %s267_s2 }
   0xd   :  { %242 = vmatpush3.bf16.msra.mxu0 %v239_v8 }
   0xe   :  { %244 = vmatprep.subr.bf16.mxu0 %v243_v12  ;;  %p274_p3 = por %p273_p2, %p272_p1 }
  0x10   :  { %p275_p4 = pnand %p274_p3, %p268_p0 }
  0x11   :  { %246 = vmatpush3.bf16.msra.mxu0 %v243_v12 }
  0x12   :  { %248 = vmatprep.subr.bf16.mxu0 %v247_v15 }
  0x15   :  { %250 = vmatpush3.bf16.msra.mxu0 %v247_v15 }
  0x16   :  { %252 = vmatprep.subr.bf16.mxu0 %v251_v18 }
  0x19   :  { %254 = vmatpush3.bf16.msra.mxu0 %v251_v18 }
  0x1a   :  { %257 = vmatprep.subr.msk.bf16.mxu0 %vm256_vm3, %v255_v21 }
  0x1d   :  { %260 = vmatpush3.bf16.msk.msra.mxu0 %vm256_vm3, %v255_v21 }
  0x20   :  { %229 = vmatmul.mubr.msk.f32.vlgmr.msra.gmra.mrb[0].mxu0 %vm31_vm0, %v16_v22 }
  0xf3   :  { %v230_v23 = vpop.f32.mrb[0].mxu0 }
  0xf4   :  { %v125_v24 = vmul.f32 %v230_v23, %v230_v23  ;;  %v108_v25 = vpop.f32.mrb[1].mxu0 }
  0xf5   :  { %v117_v26 = vadd.f32 %v230_v23, %v108_v25  ;;  %v124_v27 = vmul.f32 %v108_v25, %v108_v25 }
  0xf7   :  { %v118_v28 = vrot.slane %v117_v26, 4  ;;  %v126_v29 = vadd.f32 %v125_v24, %v124_v27 }
  0xf9   :  { %v119_v30 = vadd.f32 %v118_v28, %v117_v26  ;;  %v127_v31 = vrot.slane %v126_v29, 4 }
  0xfb   :  { %v120_v32 = vrot.slane %v119_v30, 2  ;;  %v128_v33 = vadd.f32 %v127_v31, %v126_v29 }
  0xfd   :  { %v121_v34 = vadd.f32 %v120_v32, %v119_v30  ;;  %v129_v35 = vrot.slane %v128_v33, 2 }
  0xff   :  { %v122_v36 = vrot.slane %v121_v34, 1  ;;  %v130_v37 = vadd.f32 %v129_v35, %v128_v33 }
 0x101   :  { %v123_v38 = vadd.f32 %v122_v36, %v121_v34  ;;  %v131_v39 = vrot.slane %v130_v37, 1 }
 0x103   :  { %v132_v40 = vadd.f32 %v131_v39, %v130_v37  ;;  %v133_v41 = vmul.f32 0.0625, %v123_v38 }
 0x105   :  { %v134_v42 = vmul.f32 0.0625, %v132_v40  ;;  %v135_v43 = vmul.f32 %v133_v41, %v133_v41 }
 0x107   :  { %v136_v44 = vsub.f32 %v134_v42, %v135_v43 }
 0x109   :  { %v137_v45 = vmax.f32 %v136_v44, 0.0 }
 0x10b   :  { %v140_v46 = vadd.f32 1e-05, %v137_v45 }
 0x10d   :  { %265 = vrsqrt.f32 %v140_v46 }
 0x117   :  { %v266_v50 = vpop.eup %265 }
 0x118   :  { %v142_v51 = vmul.f32 %v266_v50, %v138_v49 }
 0x11a   :  { %v143_v54 = vadd.f32 %v142_v51, %v142_v51  ;;  %v144_v55 = vmul.f32 %v142_v51, %v133_v41 }
 0x11c   :  { %v145_v56 = vsub.f32 %v139_v53, %v144_v55  ;;  %v150_v57 = vrot.slane %v143_v54, %v149_v52 }
 0x11e   :  { %v146_v58 = vmul.f32 2.0, %v145_v56  ;;  %v151_v59 = vmul.f32 %v150_v57, %v108_v25  ;;  %v152_v60 = vmul.f32 %v230_v23, %v150_v57 }
 0x120   :  { %v156_v61 = vrot.slane %v146_v58, %v149_v52 }
 0x122   :  { %v157_v62 = vadd.f32 %v156_v61, %v151_v59  ;;  %v158_v63 = vadd.f32 %v156_v61, %v152_v60 }
 0x124   :  { %v159_v0 = vmax.f32 %v157_v62, 0.0  ;;  %v160_v1 = vmax.f32 %v158_v63, 0.0 }
 0x126   :  { %v161_v2 = vmin.f32 %v159_v0, 12.0  ;;  %v162_v3 = vmin.f32 %v160_v1, 12.0 }
 0x128   :  { %163 = vst [vmem:[#allocation2] sm:$0xff] %v161_v2  ;;  %164 = vst [vmem:[#allocation2 + $0x8] sm:$0xff] %v162_v3 }
 0x129   :  { %278 = shalt.err (!%p275_p4)
}
 0x12a   :  { %s279_s23 = scalar_lea.hbm %s386_s3, 256 }
 0x12b   :  { %p280_p5 = scmp.ne.s32.totalorder %s386_s3, %s279_s23  ;;  %p283_p6 = scmp.lt.u32.totalorder %s279_s23, %s386_s3 }
 0x12d   :  { %p285_p7 = pnand %p283_p6, %p280_p5 }
 0x12f   :  { %288 = shalt.err (!%p285_p7)
}
 0x130   :  { %s293_s28 = smov 128   ;;  %s294_s29 = smov 8  }
 0x131   :  { %176 = dma.vmem_to_hbm [thread:$0]  %s171_s20, 256, %s386_s3, [#allocation3], %s293_s28, %s293_s28, %s294_s29  }
 0x132   :  { %289 = dma.done.wait [#allocation3], 256  }
 0x133   :  { %290 = vsyncadd [#allocation3], 4294967040 }
 0x134   :  { %180 = vsyncpa [#allocation3], 1 }

</bundles_post_ra>
